<compile_context>
chip_gen: v7x
topology: tpu7x:2x2x1
jax: 0.10.0
libtpu: 0.0.40
codegen_flags: <defaults>
</compile_context>

<pallas_src>
import functools

import jax
import jax.numpy as jnp
from jax.experimental import pallas as pl
from jax.experimental.pallas import tpu as pltpu


# ----------------------------- kernels --------------------------------------


def _fused_se_kernel(x_ref, w1t_ref, w2_ref, o_ref, *, inv_hw, mul_in_x_dtype):
    """One batch per grid step: mean -> MLP -> sigmoid -> scale, all in VMEM.

    x_ref/o_ref: (1, C, HW) native dtype
    w1t_ref:     (C, C_red) f32  (= fc1.weight.T)
    w2_ref:      (C, C_red) f32  (= fc2.weight)
    """
    x = x_ref[0]                                                    # (C, HW)
    xf = x.astype(jnp.float32)
    means = jnp.sum(xf, axis=-1, keepdims=True) * inv_hw            # (C, 1)
    # hidden[j] = relu(sum_c w1[j, c] * mean[c])  -> row (1, C_red)
    hidden = jnp.maximum(
        jnp.sum(w1t_ref[...] * means, axis=0, keepdims=True), 0.0)
    # scale[c] = sigmoid(sum_j w2[c, j] * hidden[j]) -> column (C, 1)
    scale = jax.nn.sigmoid(
        jnp.sum(w2_ref[...] * hidden, axis=-1, keepdims=True))
    if mul_in_x_dtype:
        o_ref[0] = x * scale.astype(x.dtype)          # native bf16 multiply
    else:
        o_ref[0] = (xf * scale).astype(o_ref.dtype)


def _row_sum_kernel(x_ref, sum_ref, *, hw_total, tile_hw, need_mask):
    """Per-row spatial sums; HW reduction axis is grid axis 1 (innermost).

    The f32 output block is resident across the reduction axis (same block
    index), so it doubles as the accumulator (P3 pattern, no scratch needed).
    """
    s = pl.program_id(1)

    @pl.when(s == 0)
    def _init():
        sum_ref[...] = jnp.zeros_like(sum_ref)

    xb = x_ref[...].astype(jnp.float32)               # (tile_r, tile_hw)
    if need_mask:
        lane = jax.lax.broadcasted_iota(jnp.int32, xb.shape, 1) + s * tile_hw
        xb = jnp.where(lane < hw_total, xb, 0.0)
    sum_ref[...] += jnp.sum(xb, axis=-1, keepdims=True)


def _scale_kernel(x_ref, s_ref, o_ref, *, mul_in_x_dtype):
    # x_ref/o_ref: (tile_r, tile_hw) native dtype; s_ref: (tile_r, 1) f32.
    if mul_in_x_dtype:
        o_ref[...] = x_ref[...] * s_ref[...].astype(x_ref.dtype)
    else:
        o_ref[...] = (x_ref[...].astype(jnp.float32) * s_ref[...]).astype(o_ref.dtype)


# ----------------------------- wrapper ---------------------------------------


def _aligned_cap(dim, cap, align):
    """Full dim if it fits under `cap`, else the largest multiple of `align`
    <= cap. Edge blocks are masked/clipped by Pallas where needed."""
    if dim <= cap:
        return dim
    return max(align, (cap // align) * align)


def _vmem_limit(nbytes, lo=16 << 20, hi=40 << 20):
    """Scoped-VMEM request: estimated need with headroom, clamped so it stays
    safe on every generation (v5e 128 / v6e 128 / v7x 64 MiB physical)."""
    return int(min(hi, max(lo, nbytes)))


def se_block(x_nchw, w1, w2, *, fused_block_limit_bytes=4 << 20, donate_x=False):
    """SEBlock forward (matches PyTorch SEBlock(channel=C, reduction=r)).

    x_nchw: (B, C, H, W), any float dtype (kept native through the kernels)
    w1:     (C//r, C)   -- fc[0].weight  (Linear(C, C//r, bias=False))
    w2:     (C, C//r)   -- fc[2].weight  (Linear(C//r, C, bias=False))
    """
    b, c, h, w = x_nchw.shape
    hw = h * w
    rows = b * c
    c_red = w1.shape[0]
    dtype = x_nchw.dtype
    itemsize = jnp.dtype(dtype).itemsize
    mul_in_x_dtype = dtype == jnp.bfloat16       # v6e/v7x VPUs are bf16-native

    w1f = jnp.asarray(w1, jnp.float32)
    w2f = jnp.asarray(w2, jnp.float32)

    block_bytes = c * hw * itemsize              # per-batch (C, HW) slab

    # ------------------- fused single-kernel path ----------------------------
    if block_bytes <= fused_block_limit_bytes:
        x3 = x_nchw.reshape(b, c, hw)
        kernel = functools.partial(
            _fused_se_kernel, inv_hw=1.0 / hw, mul_in_x_dtype=mul_in_x_dtype)
        w_bytes = c * c_red * 4
        need = 4 * block_bytes + 2 * c * hw * 4 + 8 * w_bytes + (2 << 20)
        out3 = pl.pallas_call(
            kernel,
            out_shape=jax.ShapeDtypeStruct((b, c, hw), dtype),
            grid=(b,),
            in_specs=[
                pl.BlockSpec((1, c, hw), lambda i: (i, 0, 0)),
                pl.BlockSpec((c, c_red), lambda i: (0, 0)),
                pl.BlockSpec((c, c_red), lambda i: (0, 0)),
            ],
            out_specs=pl.BlockSpec((1, c, hw), lambda i: (i, 0, 0)),
            compiler_params=pltpu.CompilerParams(
                dimension_semantics=("parallel",),
                vmem_limit_bytes=_vmem_limit(need)),
            cost_estimate=pl.CostEstimate(
                flops=2 * rows * hw + 4 * b * c * c_red,
                transcendentals=rows,
                bytes_accessed=2 * rows * hw * itemsize + 2 * w_bytes),
            input_output_aliases=({0: 0} if donate_x else {}),
        )(x3, w1f.T, w2f)
        return out3.reshape(b, c, h, w)

    # ------------------- fallback two-pass path ------------------------------
    x2 = x_nchw.reshape(rows, hw)                # lane-dense 2D view

    # ---- Pass 1: per-row spatial sums (tiled reduction over HW if needed) ---
    target1 = 6 << 20                            # ~6 MiB x-block per grid step
    if 8 * hw * itemsize <= target1:
        tile_hw1 = hw                            # full spatial per block
        row_cap = max(8, (target1 // (hw * itemsize)) // 8 * 8)
        tile_r1 = rows if rows <= row_cap else row_cap
    else:                                        # huge H*W: tile the HW axis
        tile_r1 = rows if rows < 8 else 8
        tile_hw1 = _aligned_cap(
            hw, max(128, target1 // (tile_r1 * itemsize)), 128)
    need_mask = (hw % tile_hw1) != 0
    grid1 = (pl.cdiv(rows, tile_r1), pl.cdiv(hw, tile_hw1))
    sum_kernel = functools.partial(
        _row_sum_kernel, hw_total=hw, tile_hw=tile_hw1, need_mask=need_mask)
    need1 = 2 * tile_r1 * tile_hw1 * (itemsize + 4) + (2 << 20)
    sums = pl.pallas_call(
        sum_kernel,
        out_shape=jax.ShapeDtypeStruct((rows, 1), jnp.float32),
        grid=grid1,
        in_specs=[pl.BlockSpec((tile_r1, tile_hw1), lambda r, s: (r, s))],
        out_specs=pl.BlockSpec((tile_r1, 1), lambda r, s: (r, 0)),
        compiler_params=pltpu.CompilerParams(
            dimension_semantics=("parallel", "arbitrary"),
            vmem_limit_bytes=_vmem_limit(need1)),
        cost_estimate=pl.CostEstimate(
            flops=rows * hw, transcendentals=0,
            bytes_accessed=rows * hw * itemsize + rows * 4),
    )(x2)

    # ---- Tiny excitation MLP, whole batch at once (plain XLA) ---------------
    means = (sums.reshape(b, c) * (1.0 / hw)).astype(jnp.float32)   # (B, C)
    hidden = jnp.maximum(means @ w1f.T, 0.0)                        # (B, C//r)
    scale = jax.nn.sigmoid(hidden @ w2f.T)                          # (B, C)
    scale_rows = scale.reshape(rows, 1)                             # (B*C, 1)

    # ---- Pass 2: streamed broadcast-scale (large, 8x128-aligned tiles) ------
    target2 = 4 << 20                            # ~4 MiB x-tile per grid step
    tile_hw2 = _aligned_cap(hw, 2048, 128)
    row_cap2 = max(8, (target2 // (tile_hw2 * itemsize)) // 8 * 8)
    tile_r2 = rows if rows <= row_cap2 else row_cap2
    grid2 = (pl.cdiv(rows, tile_r2), pl.cdiv(hw, tile_hw2))
    scale_kernel = functools.partial(_scale_kernel, mul_in_x_dtype=mul_in_x_dtype)
    need2 = 4 * tile_r2 * tile_hw2 * itemsize + 4 * tile_r2 * 4 + (2 << 20)
    out2 = pl.pallas_call(
        scale_kernel,
        out_shape=jax.ShapeDtypeStruct((rows, hw), dtype),
        grid=grid2,
        in_specs=[
            pl.BlockSpec((tile_r2, tile_hw2), lambda r, s: (r, s)),
            pl.BlockSpec((tile_r2, 1), lambda r, s: (r, 0)),
        ],
        out_specs=pl.BlockSpec((tile_r2, tile_hw2), lambda r, s: (r, s)),
        compiler_params=pltpu.CompilerParams(
            dimension_semantics=("parallel", "parallel"),
            vmem_limit_bytes=_vmem_limit(need2)),
        cost_estimate=pl.CostEstimate(
            flops=rows * hw, transcendentals=0,
            bytes_accessed=2 * rows * hw * itemsize + rows * 4),
        input_output_aliases=({0: 0} if donate_x else {}),
    )(x2, scale_rows)
    return out2.reshape(b, c, h, w)


# ----------------------------- reference -------------------------------------


def se_block_ref(x_nchw, w1, w2):
    """Pure-JAX reference mirroring the PyTorch SEBlock."""
    y = jnp.mean(x_nchw.astype(jnp.float32), axis=(2, 3))           # (B, C)
    y = jnp.maximum(y @ jnp.asarray(w1, jnp.float32).T, 0.0)        # (B, C//r)
    y = jax.nn.sigmoid(y @ jnp.asarray(w2, jnp.float32).T)          # (B, C)
    return (x_nchw.astype(jnp.float32) * y[:, :, None, None]).astype(x_nchw.dtype)


# ----------------------------- test ------------------------------------------

if __name__ == "__main__":
    se_jit = jax.jit(se_block)                                       # fused path
    se_twopass = jax.jit(functools.partial(se_block, fused_block_limit_bytes=0))

    # Case 1: small shapes consistent with the module (batch=2, channels=4, 16x16).
    B, C, H, W = 2, 4, 16, 16
    C_red = C // 2
    kx, k1, k2 = jax.random.split(jax.random.PRNGKey(0), 3)
    x = jax.random.normal(kx, (B, C, H, W), dtype=jnp.float32)
    w1 = jax.random.normal(k1, (C_red, C), dtype=jnp.float32) * 0.5   # fc1.weight
    w2 = jax.random.normal(k2, (C, C_red), dtype=jnp.float32) * 0.5   # fc2.weight

    ref = se_block_ref(x, w1, w2)
    out = jax.block_until_ready(se_jit(x, w1, w2))                    # fused
    assert out.shape == (B, C, H, W)
    assert jnp.allclose(out, ref, atol=1e-5, rtol=1e-5)
    out_fb = jax.block_until_ready(se_twopass(x, w1, w2))             # forced two-pass
    assert jnp.allclose(out_fb, ref, atol=1e-5, rtol=1e-5)

    # Case 2: larger channel count (fused path with C=256 and forced two-pass).
    B2, C2, H2, W2 = 2, 256, 32, 32
    C2_red = C2 // 2
    kx2, k12, k22 = jax.random.split(jax.random.PRNGKey(1), 3)
    x_b = jax.random.normal(kx2, (B2, C2, H2, W2), dtype=jnp.float32)
    w1_b = jax.random.normal(k12, (C2_red, C2), dtype=jnp.float32) * 0.1
    w2_b = jax.random.normal(k22, (C2, C2_red), dtype=jnp.float32) * 0.1

    ref_b = se_block_ref(x_b, w1_b, w2_b)
    out_b = jax.block_until_ready(se_jit(x_b, w1_b, w2_b))
    assert jnp.allclose(out_b, ref_b, atol=1e-4, rtol=1e-4)
    out_b2 = jax.block_until_ready(se_twopass(x_b, w1_b, w2_b))
    assert jnp.allclose(out_b2, ref_b, atol=1e-4, rtol=1e-4)

    # Case 3: huge spatial dim -> default path falls back to two-pass and
    # exercises the HW-axis reduction with masked edge lanes.
    B3, C3, H3, W3 = 1, 8, 512, 512
    C3_red = C3 // 2
    kx3, k13, k23 = jax.random.split(jax.random.PRNGKey(2), 3)
    x_c = jax.random.normal(kx3, (B3, C3, H3, W3), dtype=jnp.float32)
    w1_c = jax.random.normal(k13, (C3_red, C3), dtype=jnp.float32) * 0.3
    w2_c = jax.random.normal(k23, (C3, C3_red), dtype=jnp.float32) * 0.3

    ref_c = se_block_ref(x_c, w1_c, w2_c)
    out_c = jax.block_until_ready(se_jit(x_c, w1_c, w2_c))
    assert jnp.allclose(out_c, ref_c, atol=1e-4, rtol=1e-4)

    print("KERNEL_OK")
</pallas_src>

<mosaic_0001>
module attributes {stable_mosaic.version = 11 : i64} {
  func.func @_fused_se_kernel(%arg0: i32, %arg1: memref<1x4x256xf32, #tpu.memory_space<vmem>>, %arg2: memref<4x2xf32, #tpu.memory_space<vmem>>, %arg3: memref<4x2xf32, #tpu.memory_space<vmem>>, %arg4: memref<1x4x256xf32, #tpu.memory_space<vmem>>) attributes {dimension_semantics = [#tpu.dimension_semantics<parallel>], iteration_bounds = array<i64: 2>, scalar_prefetch = 0 : i64, scratch_operands = 0 : i64, tpu.core_type = #tpu.core_type<tc>, window_params = [{transform_indices = @transform_0, window_bounds = array<i64: 1, 4, 256>}, {pipeline_mode = #tpu.pipeline_mode<synchronous>, transform_indices = @transform_1, window_bounds = array<i64: 4, 2>}, {pipeline_mode = #tpu.pipeline_mode<synchronous>, transform_indices = @transform_2, window_bounds = array<i64: 4, 2>}, {transform_indices = @transform_3, window_bounds = array<i64: 1, 4, 256>}]} {
    %c0 = arith.constant 0 : index
    %c0_0 = arith.constant 0 : index
    %c0_1 = arith.constant 0 : index
    %0 = vector.load %arg1[%c0, %c0_0, %c0_1] : memref<1x4x256xf32, #tpu.memory_space<vmem>>, vector<1x4x256xf32>
    %1 = vector.shape_cast %0 : vector<1x4x256xf32> to vector<4x256xf32>
    %cst = arith.constant dense<0.000000e+00> : vector<4xf32>
    %2 = vector.multi_reduction <add>, %1, %cst [1] : vector<4x256xf32> to vector<4xf32>
    %3 = vector.shape_cast %2 : vector<4xf32> to vector<4x1xf32>
    %cst_2 = arith.constant 3.906250e-03 : f32
    %4 = vector.broadcast %cst_2 : f32 to vector<4x1xf32>
    %5 = arith.mulf %3, %4 : vector<4x1xf32>
    %c0_3 = arith.constant 0 : index
    %c0_4 = arith.constant 0 : index
    %6 = vector.load %arg2[%c0_3, %c0_4] : memref<4x2xf32, #tpu.memory_space<vmem>>, vector<4x2xf32>
    %7 = vector.broadcast %5 : vector<4x1xf32> to vector<4x2xf32>
    %8 = arith.mulf %6, %7 : vector<4x2xf32>
    %cst_5 = arith.constant dense<0.000000e+00> : vector<2xf32>
    %9 = vector.multi_reduction <add>, %8, %cst_5 [0] : vector<4x2xf32> to vector<2xf32>
    %10 = vector.shape_cast %9 : vector<2xf32> to vector<1x2xf32>
    %cst_6 = arith.constant 0.000000e+00 : f32
    %11 = vector.broadcast %cst_6 : f32 to vector<1x2xf32>
    %12 = arith.maximumf %10, %11 : vector<1x2xf32>
    %c0_7 = arith.constant 0 : index
    %c0_8 = arith.constant 0 : index
    %13 = vector.load %arg3[%c0_7, %c0_8] : memref<4x2xf32, #tpu.memory_space<vmem>>, vector<4x2xf32>
    %14 = vector.broadcast %12 : vector<1x2xf32> to vector<4x2xf32>
    %15 = arith.mulf %13, %14 : vector<4x2xf32>
    %cst_9 = arith.constant dense<0.000000e+00> : vector<4xf32>
    %16 = vector.multi_reduction <add>, %15, %cst_9 [1] : vector<4x2xf32> to vector<4xf32>
    %17 = vector.shape_cast %16 : vector<4xf32> to vector<4x1xf32>
    %18 = arith.negf %17 : vector<4x1xf32>
    %19 = math.exp %18 : vector<4x1xf32>
    %cst_10 = arith.constant 1.000000e+00 : f32
    %20 = vector.broadcast %cst_10 : f32 to vector<4x1xf32>
    %21 = arith.addf %20, %19 : vector<4x1xf32>
    %22 = arith.divf %20, %21 : vector<4x1xf32>
    %23 = vector.broadcast %22 : vector<4x1xf32> to vector<4x256xf32>
    %24 = arith.mulf %1, %23 : vector<4x256xf32>
    %c0_11 = arith.constant 0 : index
    %c0_12 = arith.constant 0 : index
    %c0_13 = arith.constant 0 : index
    %25 = vector.load %arg4[%c0_11, %c0_12, %c0_13] : memref<1x4x256xf32, #tpu.memory_space<vmem>>, vector<1x4x256xf32>
    %26 = vector.shape_cast %25 : vector<1x4x256xf32> to vector<4x256xf32>
    %27 = vector.shape_cast %24 : vector<4x256xf32> to vector<1x4x256xf32>
    tpu.vector_store %arg4[%c0_11, %c0_12, %c0_13], %27 {strides = array<i32>} : memref<1x4x256xf32, #tpu.memory_space<vmem>>, vector<1x4x256xf32>,
    return
  }
  func.func @transform_0(%arg0: i32) -> (i32, i32, i32) {
    %c0_i32 = arith.constant 0 : i32
    %c0_i32_0 = arith.constant 0 : i32
    %c0_i32_1 = arith.constant 0 : i32
    return %arg0, %c0_i32, %c0_i32_0 : i32, i32, i32
  }
  func.func @transform_1(%arg0: i32) -> (i32, i32) {
    %c0_i32 = arith.constant 0 : i32
    %c0_i32_0 = arith.constant 0 : i32
    %c0_i32_1 = arith.constant 0 : i32
    return %c0_i32, %c0_i32_0 : i32, i32
  }
  func.func @transform_2(%arg0: i32) -> (i32, i32) {
    %c0_i32 = arith.constant 0 : i32
    %c0_i32_0 = arith.constant 0 : i32
    %c0_i32_1 = arith.constant 0 : i32
    return %c0_i32, %c0_i32_0 : i32, i32
  }
  func.func @transform_3(%arg0: i32) -> (i32, i32, i32) {
    %c0_i32 = arith.constant 0 : i32
    %c0_i32_0 = arith.constant 0 : i32
    %c0_i32_1 = arith.constant 0 : i32
    return %arg0, %c0_i32, %c0_i32_0 : i32, i32, i32
  }
}

</mosaic_0001>

<bundles_post_ra>
// kernel: se_block.1
= control target key start
LH: loop header
LB: loop body
LE: loop exit
PB: predicated region body
PF: predicated region fallthrough
CT: control target
= control target key end

     0   :  { %s327_s12 = smov 0   ;;  %s357_s0 = inlined_call_operand.vmem [shape: f32[2,4,256], index: 0, kind: input, shape index: {}]   ;;  %s358_s1 = inlined_call_operand.vmem [shape: f32[4,2], index: 1, kind: input, shape index: {}]   ;;  %s359_s2 = inlined_call_operand.vmem [shape: f32[4,2], index: 2, kind: input, shape index: {}]   ;;  %s360_s3 = inlined_call_operand.vmem [shape: f32[2,4,256], index: 3, kind: output, shape index: {}]  }
   0x1 LB: > { %s270_s13 = sadd.s32 4294967295, %s304_s12   ;;  %p274_p0 = scmp.ge.s32.totalorder %s304_s12, 1  ;;  %s304_s12 = sphi %s327_s12, %s13_s12  }
   0x2   : > { %p137_p1 = scmp.lt.s32.totalorder %s304_s12, 3 }
   0x4   : > { %p138_p2 = pnand %p274_p0, %p137_p1 }
   0x5   : > { %p161_p3 = scmp.lt.s32.totalorder (!%p138_p2), %s270_s13, 1  ;;  %vm175_vm0 = vcmask (!%p138_p2), 1043456   ;;  %v182_v5 = vld [vmem:[%s358_s1] sm:$0xf] (!%p138_p2)  ;;  %vm184_vm1 = vcmask (!%p138_p2), 11264   ;;  %v208_v26 = vlaneseq (!%p138_p2) }
   0x6   : > { %141 = sbr.rel (%p138_p2) target bundleno = 359 (0x167), region = 32  ;;  %v193_v16 = vld [vmem:[%s359_s2] sm:$0xf] (!%p138_p2)  ;;  %v306_v24 = vmov (!%p138_p2), 839922192  }
   0x7   : > { %v206_v25 = vunpack.c.l.s4 (!%p138_p2), %v306_v24  ;;  %v209_v28 = vshrl.u32 (!%p138_p2), %v208_v26, 7 }
   0x9   : > { %v207_v27 = vunpack.c.0.s8 (!%p138_p2), %v206_v25 }
   0xb   : > { %v210_v29 = vsub.s32 (!%p138_p2), %v207_v27, %v209_v28 }
   0xd   : > { %s362_s13 = smov (!%p161_p3, %s270_s13), 1 }
   0xe   : > { %s282_s14 = sshll.u32 %s362_s13, 3 }
   0xf   : > { %s165_s17 = scalar_lea.vmem %s357_s0, %s282_s14  ;;  %s170_s24 = scalar_lea.vmem %s360_s3, %s282_s14 }
  0x10   : > { %v171_v0 = vld [vmem:[%s165_s17] sm:$0xff] }
  0x11   : > { %v173_v1 = vcombine.high %v171_v0, %v171_v0  ;;  %v176_v2 = vsel %vm175_vm0, %v171_v0, 0.0 }
  0x13   : > { %v177_v3 = vsel %vm175_vm0, %v173_v1, 0.0 }
  0x14   : > { %v178_v4 = vadd.f32 %v177_v3, %v176_v2 }
  0x16   : > { %179 = vadd.xlane.f32.xlu0 %v178_v4 }
  0xa3   : > { %v180_v6 = vpop.xlane.xlu0 %179 }
  0xa4   : > { %v181_v7 = vmul.f32 0.00390625, %v180_v6 }
  0xa6   : > { %v183_v8 = vmul.f32 %v182_v5, %v181_v7 }
  0xa8   : > { %v185_v9 = vsel %vm184_vm1, %v183_v8, 0.0 }
  0xa9   : > { %v186_v10 = vrot.slane %v185_v9, 4 }
  0xab   : > { %v187_v11 = vadd.f32 %v186_v10, %v185_v9 }
  0xad   : > { %v188_v12 = vrot.slane %v187_v11, 2 }
  0xaf   : > { %v189_v13 = vadd.f32 %v188_v12, %v187_v11 }
  0xb1   : > { %v190_v14 = vrot.slane %v189_v13, 1 }
  0xb3   : > { %v191_v15 = vadd.f32 %v190_v14, %v189_v13 }
  0xb5   : > { %v192_v17 = vmax.f32 %v191_v15, 0.0 }
  0xb7   : > { %v194_v18 = vmul.f32 %v193_v16, %v192_v17 }
  0xb9   : > { %v195_v19 = vsel %vm184_vm1, %v194_v18, 0.0 }
  0xba   : > { %196 = vadd.xlane.f32.xlu0 %v195_v19 }
 0x147   : > { %v197_v20 = vpop.xlane.xlu0 %196 }
 0x148   : > { %v279_v21 = vmul.f32 -1.442695, %v197_v20 }
 0x14a   : > { %294 = vpow2.f32 %v279_v21 }
 0x154   : > { %v295_v22 = vpop.eup %294 }
 0x155   : > { %v201_v23 = vadd.f32 1.0, %v295_v22 }
 0x157   : > { %296 = vrcp.f32 %v201_v23 }
 0x161   : > { %v297_v30 = vpop.eup %296 }
 0x162   : > { %v211_v31 = vrot.slane %v297_v30, %v210_v29 }
 0x164   : > { %v213_v32 = vmul.f32 %v211_v31, %v171_v0 }
 0x166   : > { %214 = vst [vmem:[%s170_s24] sm:$0xff] %v213_v32 }
 0x167 PF: > { %s13_s12 = sadd.s32 1, %s304_s12  }
 0x168   : > { %p10_p4 = scmp.ge.s32.totalorder %s13_s12, 4  }
 0x16a   :  { %12 = sbr.rel (!%p10_p4) target bundleno = 1 (0x1), region = 62 }

</bundles_post_ra>
